<compile_context>
chip_gen: v7x
topology: tpu7x:2x2x1
jax: 0.10.0
libtpu: 0.0.40
codegen_flags: <defaults>
</compile_context>

<pallas_src>
import math

import jax
import jax.numpy as jnp
from jax.experimental import pallas as pl
from jax.experimental.pallas import tpu as pltpu

_MAX_LANE_TILE = 8192          # lane elements per block (keeps padded bias blocks small)
_MAX_BIAS_ROW_BYTES = 1 << 20  # cap on the pre-expanded bias row for the lcm fold


def _target_block_bytes():
    # ~2 MiB blocks keep the double-buffered in+out(+bias) footprint well under
    # v5e's 16 MiB scoped VMEM default; v7x's 3.2 TB/s HBM prefers bigger blocks
    # to amortize the ~0.35 us fixed per-grid-step overhead.
    try:
        kind = jax.devices()[0].device_kind.lower()
    except Exception:
        kind = ""
    return (4 << 20) if "v7" in kind else (2 << 20)


def _sublanes(dtype):
    # Rows packed per (sublane, 128-lane) tile: 8 for f32, 16 for bf16, 32 for int8/fp8.
    return max(8, 32 // jnp.dtype(dtype).itemsize)


def _round_up(x, m):
    return -(-x // m) * m


def _pick_tiles(R, L, dtype, ensure_multi_block=True):
    """Pick (TR, TL) obeying the (8,128)/full-extent rule, sized from the padded
    VMEM footprint (lanes rounded up to 128, rows to the packed sublane count)."""
    target = _target_block_bytes()
    itemsize = jnp.dtype(dtype).itemsize
    sub = _sublanes(dtype)
    if L % 128 == 0:
        lane_cap = max(128, (target // (sub * itemsize)) // 128 * 128)
        TL = min(L, _MAX_LANE_TILE, lane_cap)
    else:
        TL = L  # full extent (physically padded to a 128-lane multiple in VMEM)
    TL_phys = _round_up(TL, 128)
    rows = max(sub, (target // (TL_phys * itemsize)) // sub * sub)
    TR = R if rows >= R else rows
    if ensure_multi_block and TR >= R and TL >= L and R > sub:
        # Full-extent tile would give a 1x1 grid: halve the row tile so both
        # v7x TensorCores get work (harmless on single-TC v5e/v6e).
        TR = max(sub, ((R + 1) // 2) // sub * sub)
    return TR, TL


def _bias_add_kernel(x_ref, b_ref, o_ref):
    # b_ref broadcasts over rows ((1, TL)) or over lanes/batch ((TC, 1) vs (1, TC, TS)).
    o_ref[...] = x_ref[...] + b_ref[...]


def _row_broadcast_add(x2, brow):
    """x2: (R, L), brow: (1, L) -> x2 + brow (bias broadcast over rows)."""
    R, L = x2.shape
    TR, TL = _pick_tiles(R, L, x2.dtype)
    grid = (pl.cdiv(R, TR), pl.cdiv(L, TL))
    return pl.pallas_call(
        _bias_add_kernel,
        out_shape=jax.ShapeDtypeStruct((R, L), x2.dtype),
        grid=grid,
        in_specs=[
            pl.BlockSpec((TR, TL), lambda i, j: (i, j)),
            pl.BlockSpec((1, TL), lambda i, j: (0, j)),
        ],
        out_specs=pl.BlockSpec((TR, TL), lambda i, j: (i, j)),
        compiler_params=pltpu.CompilerParams(
            dimension_semantics=("parallel", "parallel"),
        ),
    )(x2, brow)


def _channel_broadcast_add(x3, bias_c1):
    """x3: (N, C, S), bias_c1: (C, 1) -> x3 + bias (broadcast over N and S).

    The (C, 1) bias parameter is indexed per channel block directly by the
    BlockSpec index_map -- no (N*C,) bias materialization."""
    N, C, S = x3.shape
    target = _target_block_bytes()
    itemsize = jnp.dtype(x3.dtype).itemsize
    sub = _sublanes(x3.dtype)
    # Lane tile: multiple of 128 (ragged edge is masked) or the full extent.
    lane_cap = min(_MAX_LANE_TILE, max(128, (target // (sub * itemsize)) // 128 * 128))
    TS = S if S <= lane_cap else lane_cap
    TS_phys = _round_up(TS, 128)
    rows = max(sub, (target // (TS_phys * itemsize)) // sub * sub)
    TC = C if rows >= C else rows
    grid = (N, pl.cdiv(C, TC), pl.cdiv(S, TS))
    return pl.pallas_call(
        _bias_add_kernel,
        out_shape=jax.ShapeDtypeStruct((N, C, S), x3.dtype),
        grid=grid,
        in_specs=[
            pl.BlockSpec((1, TC, TS), lambda n, c, s: (n, c, s)),
            pl.BlockSpec((TC, 1), lambda n, c, s: (c, 0)),
        ],
        out_specs=pl.BlockSpec((1, TC, TS), lambda n, c, s: (n, c, s)),
        compiler_params=pltpu.CompilerParams(
            dimension_semantics=("parallel", "parallel", "parallel"),
        ),
    )(x3, bias_c1)


def add_bias_2d(x, bias_c1):
    """x: (N, C), bias_c1: (C, 1) parameter. Returns x + bias."""
    N, C = x.shape
    bias_vec = bias_c1.reshape(C).astype(x.dtype)
    itemsize = jnp.dtype(x.dtype).itemsize
    if C % 128 == 0:
        # Already lane-dense in the natural layout.
        return _row_broadcast_add(x, bias_vec.reshape(1, C))
    # Fold rows onto the 128-lane axis: (N, C) -> (N*C//L, L), L = lcm(C, 128)
    # (zero-copy row-major reshape); bias becomes a small pre-tiled lane row.
    L = math.lcm(C, 128)
    if (N * C) % L == 0 and (L * itemsize <= _MAX_BIAS_ROW_BYTES or (N * C) // L >= 8):
        R = (N * C) // L
        brow = jnp.tile(bias_vec, L // C).reshape(1, L)
        return _row_broadcast_add(x.reshape(R, L), brow).reshape(N, C)
    # TODO(synk): for ragged N, split into a folded bulk + tiny natural tail
    # instead of running all rows lane-sparse; natural layout kept here.
    return _row_broadcast_add(x, bias_vec.reshape(1, C))


def add_bias_4d(x, bias_c1):
    """x: (N, C, H, W) NCHW, bias_c1: (C, 1) parameter. Returns x + bias."""
    N, C, H, W = x.shape
    bias_vec = bias_c1.reshape(C).astype(x.dtype)
    itemsize = jnp.dtype(x.dtype).itemsize
    hw = H * W
    chw = C * hw
    # Fold #1: channels+spatial fold directly onto the lane axis (unmasked stores).
    if chw % 128 == 0:
        x2 = x.reshape(N, chw)
        # NOTE: in real use this expanded bias row is a function of the
        # parameter only and could be cached / constant-folded across calls.
        brow = jnp.repeat(bias_vec, hw).reshape(1, chw)
        return _row_broadcast_add(x2, brow).reshape(N, C, H, W)
    # Fold #2: fold whole images onto lcm(chw, 128)-wide lane-dense rows
    # (7x7 / 14x14 / 28x28 conv activations with batch that folds cleanly).
    L = math.lcm(chw, 128)
    if (N * chw) % L == 0 and (
        L * itemsize <= _MAX_BIAS_ROW_BYTES or (N * chw) // L >= 8
    ):
        R = (N * chw) // L
        x2 = x.reshape(R, L)
        brow = jnp.tile(jnp.repeat(bias_vec, hw), L // chw).reshape(1, L)
        return _row_broadcast_add(x2, brow).reshape(N, C, H, W)
    # Fallback: (N, C, HW) with the original (C, 1) bias indexed per channel
    # block by the BlockSpec index_map (no jnp.tile(bias, N)).
    out3 = _channel_broadcast_add(x.reshape(N, C, hw), bias_vec.reshape(C, 1))
    return out3.reshape(N, C, H, W)


def add_bias(x, bias_c1):
    """Forward of AddBias: x 2D (N, C) or 4D (N, C, H, W); bias_c1 is (C, 1)."""
    if x.ndim == 2:
        return add_bias_2d(x, bias_c1)
    elif x.ndim == 4:
        return add_bias_4d(x, bias_c1)
    else:
        raise ValueError("AddBias expects 2D or 4D input")


if __name__ == "__main__":
    key = jax.random.PRNGKey(0)
    ks = jax.random.split(key, 10)

    # Parameter stored as (C, 1), like nn.Parameter(bias.unsqueeze(1)).
    C = 4
    bias_vec = jax.random.normal(ks[0], (C,), dtype=jnp.float32)
    bias_param = bias_vec[:, None]  # (C, 1)

    # 4D, chw % 128 == 0: lane-dense (N, C*H*W) fold.
    x4 = jax.random.normal(ks[1], (2, C, 16, 16), dtype=jnp.float32)
    out4 = jax.block_until_ready(add_bias(x4, bias_param))
    ref4 = x4 + bias_vec.reshape(1, C, 1, 1)

    # 4D, chw % 128 != 0 but batch folds via lcm (7x7 conv activations).
    C2 = 32
    bias2 = jax.random.normal(ks[2], (C2,), dtype=jnp.float32)
    x4b = jax.random.normal(ks[3], (4, C2, 7, 7), dtype=jnp.float32)
    out4b = jax.block_until_ready(add_bias(x4b, bias2[:, None]))
    ref4b = x4b + bias2.reshape(1, C2, 1, 1)

    # 4D, no lane fold possible -> per-channel (N, C, HW) fallback path.
    C3 = 5
    bias3 = jax.random.normal(ks[4], (C3,), dtype=jnp.float32)
    x4c = jax.random.normal(ks[5], (3, C3, 7, 7), dtype=jnp.float32)
    out4c = jax.block_until_ready(add_bias(x4c, bias3[:, None]))
    ref4c = x4c + bias3.reshape(1, C3, 1, 1)

    # 2D, folds lane-dense: (64, 4) -> (2, 128).
    x2a = jax.random.normal(ks[6], (64, C), dtype=jnp.float32)
    out2a = jax.block_until_ready(add_bias(x2a, bias_param))
    ref2a = x2a + bias_vec.reshape(1, C)

    # 2D, does not fold (N not a multiple of lcm(C,128)//C): natural fallback.
    x2b = jax.random.normal(ks[7], (8, C), dtype=jnp.float32)
    out2b = jax.block_until_ready(add_bias(x2b, bias_param))
    ref2b = x2b + bias_vec.reshape(1, C)

    # 2D bf16 exercises the dtype-aware (16-row) sublane packing.
    Cb = 128
    bias_b = jax.random.normal(ks[8], (Cb,), dtype=jnp.float32)
    x2c = jax.random.normal(ks[9], (32, Cb), dtype=jnp.bfloat16)
    out2c = jax.block_until_ready(add_bias(x2c, bias_b[:, None]))
    ref2c = x2c + bias_b.astype(jnp.bfloat16).reshape(1, Cb)

    checks = [
        (out4, ref4, x4, 1e-6),
        (out4b, ref4b, x4b, 1e-6),
        (out4c, ref4c, x4c, 1e-6),
        (out2a, ref2a, x2a, 1e-6),
        (out2b, ref2b, x2b, 1e-6),
        (out2c, ref2c, x2c, 1e-2),
    ]
    for out, ref, xin, atol in checks:
        assert out.shape == xin.shape and out.dtype == xin.dtype
        assert jnp.allclose(
            out.astype(jnp.float32), ref.astype(jnp.float32), atol=atol
        )

    print("KERNEL_OK")
</pallas_src>

<mosaic_0001>
module attributes {stable_mosaic.version = 11 : i64} {
  func.func @_bias_add_kernel(%arg0: i32, %arg1: i32, %arg2: memref<2x1024xf32, #tpu.memory_space<vmem>>, %arg3: memref<1x1024xf32, #tpu.memory_space<vmem>>, %arg4: memref<2x1024xf32, #tpu.memory_space<vmem>>) attributes {dimension_semantics = [#tpu.dimension_semantics<parallel>, #tpu.dimension_semantics<parallel>], iteration_bounds = array<i64: 1, 1>, scalar_prefetch = 0 : i64, scratch_operands = 0 : i64, tpu.core_type = #tpu.core_type<tc>, window_params = [{transform_indices = @transform_0, window_bounds = array<i64: 2, 1024>}, {transform_indices = @transform_1, window_bounds = array<i64: 1, 1024>}, {transform_indices = @transform_2, window_bounds = array<i64: 2, 1024>}]} {
    %c0 = arith.constant 0 : index
    %c0_0 = arith.constant 0 : index
    %0 = vector.load %arg2[%c0, %c0_0] : memref<2x1024xf32, #tpu.memory_space<vmem>>, vector<2x1024xf32>
    %c0_1 = arith.constant 0 : index
    %c0_2 = arith.constant 0 : index
    %1 = vector.load %arg3[%c0_1, %c0_2] : memref<1x1024xf32, #tpu.memory_space<vmem>>, vector<1x1024xf32>
    %2 = vector.broadcast %1 : vector<1x1024xf32> to vector<2x1024xf32>
    %3 = arith.addf %0, %2 : vector<2x1024xf32>
    %c0_3 = arith.constant 0 : index
    %c0_4 = arith.constant 0 : index
    %4 = vector.load %arg4[%c0_3, %c0_4] : memref<2x1024xf32, #tpu.memory_space<vmem>>, vector<2x1024xf32>
    tpu.vector_store %arg4[%c0_3, %c0_4], %3 {strides = array<i32>} : memref<2x1024xf32, #tpu.memory_space<vmem>>, vector<2x1024xf32>,
    return
  }
  func.func @transform_0(%arg0: i32, %arg1: i32) -> (i32, i32) {
    %c0_i32 = arith.constant 0 : i32
    return %arg0, %arg1 : i32, i32
  }
  func.func @transform_1(%arg0: i32, %arg1: i32) -> (i32, i32) {
    %c0_i32 = arith.constant 0 : i32
    %c0_i32_0 = arith.constant 0 : i32
    return %c0_i32, %arg1 : i32, i32
  }
  func.func @transform_2(%arg0: i32, %arg1: i32) -> (i32, i32) {
    %c0_i32 = arith.constant 0 : i32
    return %arg0, %arg1 : i32, i32
  }
}

</mosaic_0001>

<bundles_post_ra>
// kernel: tpu_custom_call.1
= control target key start
LH: loop header
LB: loop body
LE: loop exit
PB: predicated region body
PF: predicated region fallthrough
CT: control target
= control target key end

     0   :  { %7 = vsyncpa [#allocation3], 0  ;;  %s259_s0 = inlined_call_operand.hbm [shape: f32[2,1024], index: 0, kind: input, shape index: {}]   ;;  %s260_s1 = inlined_call_operand.hbm [shape: f32[1,1024], index: 1, kind: input, shape index: {}]   ;;  %s261_s2 = inlined_call_operand.hbm [shape: f32[2,1024], index: 2, kind: output, shape index: {}]  }
   0x1   :  { %8 = vsyncpa [#allocation6], 0 }
   0x2   :  { %9 = vsyncpa [#allocation4], 0  ;;  %s204_s9 = smov [#allocation2]   ;;  %s205_s11 = smov [#allocation5]  }
   0x3   :  { %s16_s10 = sshll.u32 %s204_s9, 4  ;;  %s26_s12 = sshll.u32 %s205_s11, 4  ;;  %s17_s10 = int_to_ptr.vmem [resolvable:$true] %s16_s10  ;;  %s27_s12 = int_to_ptr.vmem [resolvable:$true] %s26_s12 }
   0x4   :  { %s132_s15 = scalar_lea.hbm %s259_s0, 256 }
   0x5   :  { %p133_p0 = scmp.ne.s32.totalorder %s259_s0, %s132_s15  ;;  %p136_p1 = scmp.lt.u32.totalorder %s132_s15, %s259_s0 }
   0x7   :  { %p138_p2 = pnand %p136_p1, %p133_p0 }
   0x9   :  { %141 = shalt.err (!%p138_p2)
}
   0xa   :  { %s142_s20 = scalar_lea.vmem %s17_s10, 256  ;;  %p147_p4 = scmp.lt.s32.totalorder %s17_s10, %s17_s10 }
   0xb   :  { %p143_p3 = scmp.ne.s32.totalorder %s17_s10, %s142_s20  ;;  %p148_p5 = scmp.lt.s32.totalorder %s142_s20, %s142_s20 }
   0xd   :  { %p149_p6 = por %p148_p5, %p147_p4 }
   0xf   :  { %p150_p7 = pnand %p149_p6, %p143_p3 }
  0x11   :  { %153 = shalt.err (!%p150_p7)
}
  0x12   :  { %19 = dma.hbm_to_vmem [thread:$0]  %s259_s0, 256, %s17_s10, [#allocation3]  }
  0x13   :  { %s154_s25 = scalar_lea.hbm %s260_s1, 128 }
  0x14   :  { %p155_p8 = scmp.ne.s32.totalorder %s260_s1, %s154_s25  ;;  %p158_p9 = scmp.lt.u32.totalorder %s154_s25, %s260_s1 }
  0x16   :  { %p160_p10 = pnand %p158_p9, %p155_p8 }
  0x18   :  { %163 = shalt.err (!%p160_p10)
}
  0x19   :  { %s164_s30 = scalar_lea.vmem %s27_s12, 128  ;;  %p169_p12 = scmp.lt.s32.totalorder %s27_s12, %s27_s12 }
  0x1a   :  { %p165_p11 = scmp.ne.s32.totalorder %s27_s12, %s164_s30  ;;  %p170_p13 = scmp.lt.s32.totalorder %s164_s30, %s164_s30 }
  0x1c   :  { %p171_p0 = por %p170_p13, %p169_p12 }
  0x1e   :  { %p172_p1 = pnand %p171_p0, %p165_p11 }
  0x20   :  { %175 = shalt.err (!%p172_p1)
}
  0x21   :  { %29 = dma.hbm_to_vmem [thread:$0]  %s260_s1, 128, %s27_s12, [#allocation6]  }
  0x22   :  { %198 = dma.done.wait [#allocation3], 256  }
  0x23   :  { %199 = vsyncadd [#allocation3], 4294967040 }
  0x24   :  { %200 = dma.done.wait [#allocation6], 128  }
  0x25   :  { %201 = vsyncadd [#allocation6], 4294967168  ;;  %v40_v0 = vlaneseq  ;;  %v206_v1 = vmov 1983009808   ;;  %v38_v13 = vld [vmem:[#allocation5] sm:$0xff]  ;;  %v36_v29 = vld [vmem:[#allocation2] sm:$0xff] }
  0x26   :  { %v75_v2 = vunpack.c.l.s4 %v206_v1  ;;  %v37_v33 = vld [vmem:[#allocation2 + $0x8] sm:$0xff]  ;;  %s207_s1 = smov [#allocation7]  }
  0x27   :  { %v41_v3 = vshrl.u32 %v40_v0, 7  ;;  %s118_s4 = sshll.u32 %s207_s1, 4  ;;  %s119_s4 = int_to_ptr.vmem [resolvable:$true] %s118_s4 }
  0x28   :  { %v76_v4 = vunpack.c.0.s8 %v75_v2  ;;  %s176_s5 = scalar_lea.vmem %s119_s4, 256  ;;  %p181_p3 = scmp.lt.s32.totalorder %s119_s4, %s119_s4 }
  0x29   :  { %v42_v5 = vsub.s32 0, %v41_v3  ;;  %v46_v6 = vsub.s32 1, %v41_v3  ;;  %v50_v7 = vsub.s32 2, %v41_v3  ;;  %v54_v8 = vsub.s32 3, %v41_v3  ;;  %p177_p2 = scmp.ne.s32.totalorder %s119_s4, %s176_s5  ;;  %p182_p4 = scmp.lt.s32.totalorder %s176_s5, %s176_s5 }
  0x2a   :  { %v58_v9 = vsub.s32 4, %v41_v3  ;;  %v62_v10 = vsub.s32 5, %v41_v3  ;;  %v66_v11 = vsub.s32 6, %v41_v3  ;;  %v70_v12 = vsub.s32 7, %v41_v3 }
  0x2b   :  { %v79_v14 = vsub.s32 %v76_v4, %v41_v3  ;;  %v43_v15 = vrot.slane %v38_v13, %v42_v5  ;;  %v47_v16 = vrot.slane %v38_v13, %v46_v6  ;;  %v51_v17 = vrot.slane %v38_v13, %v50_v7  ;;  %p183_p5 = por %p182_p4, %p181_p3 }
  0x2c   :  { %v55_v18 = vrot.slane %v38_v13, %v54_v8  ;;  %v59_v19 = vrot.slane %v38_v13, %v58_v9  ;;  %v63_v20 = vrot.slane %v38_v13, %v62_v10  ;;  %v67_v21 = vrot.slane %v38_v13, %v66_v11 }
  0x2d   :  { %v71_v22 = vrot.slane %v38_v13, %v70_v12  ;;  %v72_v23 = vcombine.low %v43_v15, %v47_v16  ;;  %p184_p6 = pnand %p183_p5, %p177_p2 }
  0x2e   :  { %v73_v24 = vcombine.low %v51_v17, %v55_v18  ;;  %v89_v25 = vcombine.low %v59_v19, %v63_v20 }
  0x2f   :  { %v90_v26 = vcombine.low %v67_v21, %v71_v22  ;;  %v80_v27 = vrot.slane %v72_v23, %v79_v14 }
  0x30   :  { %v87_v28 = vrot.slane %v73_v24, %v79_v14  ;;  %v97_v30 = vrot.slane %v89_v25, %v79_v14 }
  0x31   :  { %v104_v31 = vrot.slane %v90_v26, %v79_v14 }
  0x32   :  { %v88_v32 = vcombine.low %v80_v27, %v87_v28 }
  0x33   :  { %v105_v34 = vcombine.low %v97_v30, %v104_v31 }
  0x34   :  { %v108_v35 = vadd.f32 %v88_v32, %v36_v29 }
  0x35   :  { %v109_v36 = vadd.f32 %v105_v34, %v37_v33 }
  0x36   :  { %110 = vst [vmem:[#allocation7] sm:$0xff] %v108_v35 }
  0x37   :  { %111 = vst [vmem:[#allocation7 + $0x8] sm:$0xff] %v109_v36 }
  0x38   :  { %187 = shalt.err (!%p184_p6)
}
  0x39   :  { %s188_s8 = scalar_lea.hbm %s261_s2, 256 }
  0x3a   :  { %p189_p7 = scmp.ne.s32.totalorder %s261_s2, %s188_s8  ;;  %p192_p8 = scmp.lt.u32.totalorder %s188_s8, %s261_s2 }
  0x3c   :  { %p194_p9 = pnand %p192_p8, %p189_p7 }
  0x3e   :  { %197 = shalt.err (!%p194_p9)
}
  0x3f   :  { %121 = dma.vmem_to_hbm [thread:$0]  %s119_s4, 256, %s261_s2, [#allocation4]  }
  0x40   :  { %202 = dma.done.wait [#allocation4], 256  }
  0x41   :  { %203 = vsyncadd [#allocation4], 4294967040 }
  0x42   :  { %125 = vsyncpa [#allocation3], 1 }
  0x43   :  { %126 = vsyncpa [#allocation6], 1 }
  0x44   :  { %127 = vsyncpa [#allocation4], 1 }

</bundles_post_ra>
